<compile_context>
chip_gen: v5e
topology: v5e:2x2
jax: 0.10.0
libtpu: 0.0.40
codegen_flags: <defaults>
</compile_context>

<pallas_src>
import jax
import jax.numpy as jnp
from jax.experimental import pallas as pl
from jax.experimental.pallas import tpu as pltpu


def _param_loss_kernel(po_ref, pg_ref, v_ref, loss_ref):
    # v_ref is (tb, td), (tb, 1), (1, td) or (1, 1); jnp broadcasting handles all.
    diff = jnp.abs(po_ref[...] - pg_ref[...]) * v_ref[...]
    loss_ref[...] = jnp.where(jnp.isnan(diff), 0.0, diff)


def _round_up(x, m):
    return ((x + m - 1) // m) * m


def _sublane_align(dtype):
    # Sublane packing: f32 -> 8, bf16 -> 16, int8/fp8 -> 32.
    return max(8, 32 // jnp.dtype(dtype).itemsize)


def param_loss(param_out, param_gt, valid, *, tile_b=512, tile_d=1024):
    """Pallas implementation of ParamLoss.forward.

    param_out, param_gt: (B, D) floating arrays (dtype preserved)
    valid: broadcastable to (B, D) — scalar, (B,), (B,1), (D,), (1,D) or (B,D)
    returns: (B, D) elementwise loss in param_out's dtype (no reduction).
    """
    param_out = jnp.asarray(param_out)
    if not jnp.issubdtype(param_out.dtype, jnp.floating):
        param_out = param_out.astype(jnp.float32)
    dtype = param_out.dtype
    param_gt = jnp.asarray(param_gt, dtype)
    valid = jnp.asarray(valid, dtype)

    B, D = param_out.shape
    row_align = _sublane_align(dtype)

    # (row_align, 128)-aligned tiles, clamped to the problem size.
    tb = min(_round_up(tile_b, row_align), _round_up(B, row_align))
    td = min(_round_up(tile_d, 128), _round_up(D, 128))

    # v7x has 2 TensorCores: if everything fits in one block, split one
    # parallel axis so both cores get work (harmless on v5e/v6e).
    if pl.cdiv(B, tb) * pl.cdiv(D, td) == 1:
        if B >= 2 * row_align:
            tb = _round_up(pl.cdiv(B, 2), row_align)
        elif D >= 2 * 128:
            td = _round_up(pl.cdiv(D, 2), 128)

    grid = (pl.cdiv(B, tb), pl.cdiv(D, td))  # feature axis j innermost
    x_spec = pl.BlockSpec((tb, td), lambda i, j: (i, j))

    # Normalize `valid` to the smallest streamable shape (never materialize a
    # (B, D) broadcast unless it truly is per-element).
    if valid.ndim == 0:
        valid = valid.reshape(1, 1)
    elif valid.ndim == 1:
        if valid.shape[0] == D:          # row mask (strict torch broadcasting)
            valid = valid.reshape(1, D)
        elif valid.shape[0] == B:        # column mask (per-sample validity)
            valid = valid.reshape(B, 1)
        else:
            valid = jnp.broadcast_to(valid, (B, D))

    if valid.shape == (1, 1):
        v_spec = pl.BlockSpec((1, 1), lambda i, j: (0, 0))
    elif valid.shape == (B, 1):
        v_spec = pl.BlockSpec((tb, 1), lambda i, j: (i, 0))
    elif valid.shape == (1, D):
        v_spec = pl.BlockSpec((1, td), lambda i, j: (0, j))
    else:
        if valid.shape != (B, D):
            valid = jnp.broadcast_to(valid, (B, D))
        v_spec = pl.BlockSpec((tb, td), lambda i, j: (i, j))

    return pl.pallas_call(
        _param_loss_kernel,
        out_shape=jax.ShapeDtypeStruct((B, D), dtype),
        grid=grid,
        in_specs=[x_spec, x_spec, v_spec],
        out_specs=x_spec,
        compiler_params=pltpu.CompilerParams(
            dimension_semantics=("parallel", "parallel"),
            vmem_limit_bytes=32 * 1024 * 1024),
    )(param_out, param_gt, valid)


def _reference(param_out, param_gt, valid):
    valid = jnp.broadcast_to(jnp.asarray(valid, param_out.dtype), param_out.shape)
    loss = jnp.abs(param_out - param_gt) * valid
    return jnp.where(jnp.isnan(loss), 0.0, loss)


if __name__ == "__main__":
    key = jax.random.PRNGKey(0)
    ks = jax.random.split(key, 9)

    # --- Case 1: module-typical small shape (SMPL params), column valid -----
    B, D = 2, 72
    po = jax.random.normal(ks[0], (B, D), jnp.float32)
    pg = jax.random.normal(ks[1], (B, D), jnp.float32)
    v = (jax.random.uniform(ks[2], (B, 1)) > 0.3).astype(jnp.float32)
    po = po.at[0, 5].set(jnp.nan)
    pg = pg.at[1, 10].set(jnp.nan)

    out = jax.block_until_ready(param_loss(po, pg, v))
    ref = _reference(po, pg, v)
    assert out.shape == (B, D) and out.dtype == jnp.float32
    assert not bool(jnp.any(jnp.isnan(out)))
    assert bool(jnp.allclose(out, ref, atol=1e-6, rtol=1e-6))

    # --- Case 2: ragged multi-block grid (partial edge blocks), full valid ---
    B2, D2 = 300, 200
    po2 = jax.random.normal(ks[3], (B2, D2), jnp.float32)
    pg2 = jax.random.normal(ks[4], (B2, D2), jnp.float32)
    v2 = (jax.random.uniform(ks[5], (B2, D2)) > 0.5).astype(jnp.float32)
    po2 = po2.at[7, 191].set(jnp.nan)
    pg2 = pg2.at[123, 0].set(jnp.nan)

    out2 = jax.block_until_ready(param_loss(po2, pg2, v2))
    ref2 = _reference(po2, pg2, v2)
    assert out2.shape == (B2, D2)
    assert not bool(jnp.any(jnp.isnan(out2)))
    assert bool(jnp.allclose(out2, ref2, atol=1e-6, rtol=1e-6))

    # --- Case 3: bf16 inputs, row-shaped valid (streamed as (1, D)) ---------
    B3, D3 = 48, 160
    po3 = jax.random.normal(ks[6], (B3, D3), jnp.bfloat16)
    pg3 = jax.random.normal(ks[7], (B3, D3), jnp.bfloat16)
    v3 = (jax.random.uniform(ks[8], (D3,)) > 0.5).astype(jnp.bfloat16)
    po3 = po3.at[3, 7].set(jnp.nan)

    out3 = jax.block_until_ready(param_loss(po3, pg3, v3))
    ref3 = _reference(po3, pg3, v3)
    assert out3.shape == (B3, D3) and out3.dtype == jnp.bfloat16
    assert not bool(jnp.any(jnp.isnan(out3)))
    assert bool(jnp.allclose(out3.astype(jnp.float32),
                             ref3.astype(jnp.float32), atol=1e-2, rtol=1e-2))

    # --- Case 4: scalar valid ------------------------------------------------
    out4 = jax.block_until_ready(param_loss(po, pg, jnp.float32(1.0)))
    ref4 = _reference(po, pg, jnp.float32(1.0))
    assert not bool(jnp.any(jnp.isnan(out4)))
    assert bool(jnp.allclose(out4, ref4, atol=1e-6, rtol=1e-6))

    # TODO(synk): if the consumer reduces the loss (mean/sum), fuse that
    # reduction into the kernel to drop the (B, D) output stream entirely.
    print("KERNEL_OK")
</pallas_src>

<mosaic_0001>
module attributes {stable_mosaic.version = 11 : i64} {
  func.func @_param_loss_kernel(%arg0: i32, %arg1: i32, %arg2: memref<8x128xf32, #tpu.memory_space<vmem>>, %arg3: memref<8x128xf32, #tpu.memory_space<vmem>>, %arg4: memref<8x1xf32, #tpu.memory_space<vmem>>, %arg5: memref<8x128xf32, #tpu.memory_space<vmem>>) attributes {dimension_semantics = [#tpu.dimension_semantics<parallel>, #tpu.dimension_semantics<parallel>], iteration_bounds = array<i64: 1, 1>, scalar_prefetch = 0 : i64, scratch_operands = 0 : i64, tpu.core_type = #tpu.core_type<tc>, window_params = [{transform_indices = @transform_0, window_bounds = array<i64: 8, 128>}, {transform_indices = @transform_1, window_bounds = array<i64: 8, 128>}, {transform_indices = @transform_2, window_bounds = array<i64: 8, 1>}, {transform_indices = @transform_3, window_bounds = array<i64: 8, 128>}]} {
    %c0 = arith.constant 0 : index
    %c0_0 = arith.constant 0 : index
    %0 = vector.load %arg2[%c0, %c0_0] : memref<8x128xf32, #tpu.memory_space<vmem>>, vector<8x128xf32>
    %c0_1 = arith.constant 0 : index
    %c0_2 = arith.constant 0 : index
    %1 = vector.load %arg3[%c0_1, %c0_2] : memref<8x128xf32, #tpu.memory_space<vmem>>, vector<8x128xf32>
    %2 = arith.subf %0, %1 : vector<8x128xf32>
    %3 = math.absf %2 : vector<8x128xf32>
    %c0_3 = arith.constant 0 : index
    %c0_4 = arith.constant 0 : index
    %4 = vector.load %arg4[%c0_3, %c0_4] : memref<8x1xf32, #tpu.memory_space<vmem>>, vector<8x1xf32>
    %5 = vector.broadcast %4 : vector<8x1xf32> to vector<8x128xf32>
    %6 = arith.mulf %3, %5 : vector<8x128xf32>
    %7 = arith.cmpf one, %6, %6 : vector<8x128xf32>
    %cst = arith.constant 0.000000e+00 : f32
    %8 = vector.broadcast %cst : f32 to vector<8x128xf32>
    %9 = arith.select %7, %8, %6 : vector<8x128xi1>, vector<8x128xf32>
    %c0_5 = arith.constant 0 : index
    %c0_6 = arith.constant 0 : index
    %10 = vector.load %arg5[%c0_5, %c0_6] : memref<8x128xf32, #tpu.memory_space<vmem>>, vector<8x128xf32>
    tpu.vector_store %arg5[%c0_5, %c0_6], %9 {strides = array<i32>} : memref<8x128xf32, #tpu.memory_space<vmem>>, vector<8x128xf32>,
    return
  }
  func.func @transform_0(%arg0: i32, %arg1: i32) -> (i32, i32) {
    %c0_i32 = arith.constant 0 : i32
    return %arg0, %arg1 : i32, i32
  }
  func.func @transform_1(%arg0: i32, %arg1: i32) -> (i32, i32) {
    %c0_i32 = arith.constant 0 : i32
    return %arg0, %arg1 : i32, i32
  }
  func.func @transform_2(%arg0: i32, %arg1: i32) -> (i32, i32) {
    %c0_i32 = arith.constant 0 : i32
    %c0_i32_0 = arith.constant 0 : i32
    return %arg0, %c0_i32 : i32, i32
  }
  func.func @transform_3(%arg0: i32, %arg1: i32) -> (i32, i32) {
    %c0_i32 = arith.constant 0 : i32
    return %arg0, %arg1 : i32, i32
  }
}

</mosaic_0001>

<bundles_post_ra>
// kernel: tpu_custom_call.1
= control target key start
LH: loop header
LB: loop body
LE: loop exit
PB: predicated region body
PF: predicated region fallthrough
CT: control target
= control target key end

     0   :  { %8 = vsyncpa [#allocation3], 0  ;;  %s159_s0 = inlined_call_operand.vmem [shape: f32[2,72], index: 0, kind: input, shape index: {}]   ;;  %s160_s1 = inlined_call_operand.hbm [shape: f32[2,72], index: 1, kind: input, shape index: {}]   ;;  %s161_s2 = inlined_call_operand.vmem [shape: f32[2,1], index: 2, kind: input, shape index: {}]   ;;  %s162_s3 = inlined_call_operand.hbm [shape: f32[2,72], index: 3, kind: output, shape index: {}]  }
   0x1   :  { %9 = vsyncpa [#allocation4], 0 }
   0x2   :  { %15 = vsyncadd [#allocation3], 96  ;;  %s16_s14 = sshll.u32 %s160_s1, 4  ;;  %s122_s15 = smov [#allocation2]   ;;  %s17_s14 = int_to_ptr.hbm [resolvable:$true] %s16_s14 }
   0x3   :  { %s18_s16 = sshll.u32 %s122_s15, 4  ;;  %s123_s17 = smov 32   ;;  %s19_s16 = int_to_ptr.vmem [resolvable:$true] %s18_s16 }
   0x4   :  { %s124_s18 = smov 2  }
   0x5   :  { %24 = dma.hbm_to_vmem [thread:$0]  %s17_s14, 32, %s19_s16, [#allocation3], %s123_s17, %s123_s17, %s124_s18  }
   0x6   :  { %118 = dma.done.wait [#allocation3], 128  }
   0x7   :  { %119 = vsyncadd [#allocation3], 4294967168  ;;  %v125_v0 = vmov 0   ;;  %v35_v1 = vld [vmem:[%s161_s2] sm:$0xff] }
   0x8   :  { %69 = vset.pattern.permute.xlu0 %v125_v0  ;;  %v31_v2 = vld [vmem:[%s159_s0] sm:$0xff] }
   0x9   :  { %38 = vperm.xlu0 %69, %v35_v1   ;;  %v32_v3 = vld [vmem:[#allocation2] sm:$0xff] }
   0xa   :  { %v33_v4 = vsub.f32 %v31_v2, %v32_v3 }
   0xc   :  { %v34_v5 = vand.u32 2147483647, %v33_v4 }
  0x7b   :  { %v39_v6 = vpop.permute.xlu0 %38 }
  0x7c   :  { %v41_v7 = vmul.f32 %v39_v6, %v34_v5 }
  0x7e   :  { %vm42_vm0 = vcmp.ne.f32.partialorder %v41_v7, %v41_v7 }
  0x7f   :  { %v43_v8 = vsel %vm42_vm0, 0.0, %v41_v7 }
  0x80   :  { %44 = vst [vmem:[#allocation5] sm:$0xff] %v43_v8 }
  0x81   :  { %48 = vsyncadd [#allocation4], 96  ;;  %s51_s24 = sshll.u32 %s162_s3, 4  ;;  %s126_s25 = smov [#allocation5]   ;;  %s52_s24 = int_to_ptr.hbm [resolvable:$true] %s51_s24 }
  0x82   :  { %s49_s2 = sshll.u32 %s126_s25, 4  ;;  %s50_s2 = int_to_ptr.vmem [resolvable:$true] %s49_s2 }
  0x83   :  { %57 = dma.vmem_to_hbm [thread:$0]  %s50_s2, 32, %s52_s24, [#allocation4], %s123_s17, %s123_s17, %s124_s18  }
  0x84   :  { %120 = dma.done.wait [#allocation4], 128  }
  0x85   :  { %121 = vsyncadd [#allocation4], 4294967168 }
  0x86   :  { %62 = vsyncpa [#allocation3], 1 }
  0x87   :  { %63 = vsyncpa [#allocation4], 1 }

</bundles_post_ra>
